<compile_context>
chip_gen: v7x
topology: tpu7x:2x2x1
jax: 0.10.0
libtpu: 0.0.40
codegen_flags: <defaults>
</compile_context>

<pallas_src>
import jax
import jax.numpy as jnp
from jax.experimental import pallas as pl
from jax.experimental.pallas import tpu as pltpu


_LANE = 128  # TPU lane width; hidden dims are zero-padded to a multiple of this.


def _round_up(n, m):
    return ((n + m - 1) // m) * m


def _cdiv(a, b):
    return -(-a // b)


def _leaky_relu(v, slope=0.01):
    # nn.LeakyReLU() default negative_slope = 0.01
    return jnp.where(v >= 0, v, slope * v)


# ---------------------------------------------------------------------------
# Kernel
# ---------------------------------------------------------------------------
def mlp_kernel(x_ref, w1_ref, w23_ref, w4t_ref, b_ref, o_ref):
    """One batch tile of the 4-layer MLP.

    x_ref   : (TB, F)      f32   batch tile
    w1_ref  : (F, Np)      bf16  layer-1 weight (VMEM-resident)
    w23_ref : (2, Np, Np)  bf16  layer-2/3 weights (resident)
    w4t_ref : (1, Np)      bf16  layer-4 weight, pre-transposed (resident)
    b_ref   : (4, Np)      f32   biases, row i -> layer i+1 (b4 at [3, 0])
    o_ref   : (1, TB)      f32   lane-dense sigmoid output
    """
    # Layer 1: (TB, F) @ (F, Np) — bf16 MXU operands, f32 accumulation.
    x = x_ref[...].astype(jnp.bfloat16)
    h = jnp.dot(x, w1_ref[...], preferred_element_type=jnp.float32)
    h = _leaky_relu(h + b_ref[0:1, :])

    # Layer 2: (TB, Np) @ (Np, Np)
    h = jnp.dot(h.astype(jnp.bfloat16), w23_ref[0],
                preferred_element_type=jnp.float32)
    h = _leaky_relu(h + b_ref[1:2, :])

    # Layer 3: (TB, Np) @ (Np, Np)
    h = jnp.dot(h.astype(jnp.bfloat16), w23_ref[1],
                preferred_element_type=jnp.float32)
    h = _leaky_relu(h + b_ref[2:3, :])

    # Layer 4, directly lane-dense: contract the hidden axis of both operands
    # (flash-attention-style NT dot) -> (1, TB).  The store / writeback DMA is
    # then one unmasked lane-dense slab instead of TB/8 masked lane-1 stores.
    z = jax.lax.dot_general(
        w4t_ref[...], h.astype(jnp.bfloat16),
        dimension_numbers=(((1,), (1,)), ((), ())),
        preferred_element_type=jnp.float32)                      # (1, TB)
    z = z + b_ref[3:4, 0:1]
    # sigmoid(z) = 1 / (1 + exp(-z)); exp + approx reciprocal run on the EUP.
    o_ref[...] = pl.reciprocal(1.0 + jnp.exp(-z), approx=True)


# ---------------------------------------------------------------------------
# One-time parameter packing (hoisted out of the forward call)
# ---------------------------------------------------------------------------
def prepare_params(params):
    """Pad hidden dims to the 128-lane width (exact: padded units have zero
    weights and bias, so they remain 0 through LeakyReLU), stack w2/w3, pack
    biases, cast MXU operands to bf16.  Call once, reuse for every forward."""
    F, N = params["w1"].shape
    Np = _round_up(max(N, _LANE), _LANE)

    def pad2(w, rows, cols):
        return jnp.pad(w, ((0, rows - w.shape[0]), (0, cols - w.shape[1])))

    w1 = pad2(params["w1"], F, Np)                                   # (F, Np)
    w23 = jnp.stack([pad2(params["w2"], Np, Np),
                     pad2(params["w3"], Np, Np)])                    # (2,Np,Np)
    w4t = pad2(params["w4"].T, 1, Np)                                # (1, Np)
    b4_row = jnp.zeros((Np,), jnp.float32).at[0].set(params["b4"][0, 0])
    bias = jnp.stack([jnp.pad(params["b1"][0], (0, Np - N)),
                      jnp.pad(params["b2"][0], (0, Np - N)),
                      jnp.pad(params["b3"][0], (0, Np - N)),
                      b4_row]).astype(jnp.float32)                   # (4, Np)

    return {"w1": w1.astype(jnp.bfloat16),
            "w23": w23.astype(jnp.bfloat16),
            "w4t": w4t.astype(jnp.bfloat16),
            "bias": bias,
            "num_features": F,
            "n_pad": Np}


# ---------------------------------------------------------------------------
# Forward wrapper
# ---------------------------------------------------------------------------
def _choose_tile(B, tile_b, min_tiles=2):
    """Batch tile: multiple of 128 (legal lane-dense out blocks / aligned x
    tiles), balanced across tiles, and >= min_tiles grid steps when B is big
    enough so dimension_semantics=('parallel',) can span both v7x cores."""
    nt = max(1, _cdiv(B, tile_b))
    if nt < min_tiles and B >= min_tiles * _LANE:
        nt = min_tiles
    tb = _round_up(_cdiv(B, nt), _LANE)
    nt = _cdiv(B, tb)
    return tb, nt


def mlp_forward(x, prep, tile_b=2048):
    """x: (B, F) float32; prep: output of prepare_params. Returns (B, 1) f32."""
    B, F = x.shape
    assert F == prep["num_features"]
    Np = prep["n_pad"]
    tb, nt = _choose_tile(B, tile_b)

    # Only pad when a single tile exceeds the whole (small) batch; larger
    # ragged batches rely on Pallas edge-block clamping (garbage rows from the
    # partial last block are sliced off below), avoiding a full HBM copy of x.
    if B < tb:
        x = jnp.pad(x, ((0, tb - B), (0, 0)))

    weight_bytes = (F * Np + 2 * Np * Np + Np) * 2 + 4 * Np * 4
    cost = pl.CostEstimate(
        flops=2 * B * (F * Np + 2 * Np * Np + Np),
        transcendentals=B,
        bytes_accessed=B * F * 4 + B * 4 + weight_bytes)

    out = pl.pallas_call(
        mlp_kernel,
        out_shape=jax.ShapeDtypeStruct((1, nt * tb), jnp.float32),
        grid=(nt,),
        in_specs=[
            pl.BlockSpec((tb, F), lambda i: (i, 0)),         # x: batch-tiled
            pl.BlockSpec((F, Np), lambda i: (0, 0)),         # w1: resident
            pl.BlockSpec((2, Np, Np), lambda i: (0, 0, 0)),  # w2/w3: resident
            pl.BlockSpec((1, Np), lambda i: (0, 0)),         # w4^T: resident
            pl.BlockSpec((4, Np), lambda i: (0, 0)),         # biases: resident
        ],
        out_specs=pl.BlockSpec((1, tb), lambda i: (0, i)),   # lane-dense out
        compiler_params=pltpu.CompilerParams(
            dimension_semantics=("parallel",)),
        cost_estimate=cost,
    )(x, prep["w1"], prep["w23"], prep["w4t"], prep["bias"])

    return out.reshape(-1, 1)[:B]


# ---------------------------------------------------------------------------
# Reference / init helpers
# ---------------------------------------------------------------------------
def init_params(key, num_features, num_neurons=10):
    """Deterministic init matching PyTorch Linear's U(-1/sqrt(fan_in), ...).
    Weights stored as (in, out) so the reference does x @ W + b."""
    dims = [(num_features, num_neurons),
            (num_neurons, num_neurons),
            (num_neurons, num_neurons),
            (num_neurons, 1)]
    params = {}
    for i, (fan_in, fan_out) in enumerate(dims, start=1):
        key, kw, kb = jax.random.split(key, 3)
        bound = 1.0 / (fan_in ** 0.5)
        params[f"w{i}"] = jax.random.uniform(
            kw, (fan_in, fan_out), jnp.float32, -bound, bound)
        params[f"b{i}"] = jax.random.uniform(
            kb, (1, fan_out), jnp.float32, -bound, bound)
    return params


def reference_forward(x, params):
    """Pure-JAX f32 reference of the PyTorch forward pass."""
    h = x
    for i in range(1, 4):
        h = _leaky_relu(h @ params[f"w{i}"] + params[f"b{i}"])
    z = h @ params["w4"] + params["b4"]
    return jax.nn.sigmoid(z)


if __name__ == "__main__":
    key = jax.random.PRNGKey(0)
    k_in1, k_in2, k_params = jax.random.split(key, 3)

    num_features, num_neurons = 32, 10
    params = init_params(k_params, num_features, num_neurons)
    prep = prepare_params(params)   # one-time packing, hoisted out of forward

    # Small batch: single (padded) tile.
    x_small = jax.random.normal(k_in1, (100, num_features), jnp.float32)
    out_small = jax.block_until_ready(mlp_forward(x_small, prep))
    ref_small = reference_forward(x_small, params)
    assert out_small.shape == (100, 1)
    # bf16 MXU operands + approx reciprocal vs. f32 reference.
    assert jnp.allclose(out_small, ref_small, atol=2e-2)

    # Ragged multi-tile grid: 3 steps, partial last block, no pre-pad copy.
    x_big = jax.random.normal(k_in2, (300, num_features), jnp.float32)
    out_big = jax.block_until_ready(mlp_forward(x_big, prep, tile_b=128))
    ref_big = reference_forward(x_big, params)
    assert out_big.shape == (300, 1)
    assert jnp.allclose(out_big, ref_big, atol=2e-2)

    print("KERNEL_OK")
</pallas_src>

<mosaic_0001>
module attributes {stable_mosaic.version = 11 : i64} {
  func.func @mlp_kernel(%arg0: i32, %arg1: memref<128x32xf32, #tpu.memory_space<vmem>>, %arg2: memref<32x128xbf16, #tpu.memory_space<vmem>>, %arg3: memref<2x128x128xbf16, #tpu.memory_space<vmem>>, %arg4: memref<1x128xbf16, #tpu.memory_space<vmem>>, %arg5: memref<4x128xf32, #tpu.memory_space<vmem>>, %arg6: memref<1x128xf32, #tpu.memory_space<vmem>>) attributes {dimension_semantics = [#tpu.dimension_semantics<parallel>], iteration_bounds = array<i64: 1>, scalar_prefetch = 0 : i64, scratch_operands = 0 : i64, tpu.core_type = #tpu.core_type<tc>, window_params = [{transform_indices = @transform_0, window_bounds = array<i64: 128, 32>}, {pipeline_mode = #tpu.pipeline_mode<synchronous>, transform_indices = @transform_1, window_bounds = array<i64: 32, 128>}, {pipeline_mode = #tpu.pipeline_mode<synchronous>, transform_indices = @transform_2, window_bounds = array<i64: 2, 128, 128>}, {pipeline_mode = #tpu.pipeline_mode<synchronous>, transform_indices = @transform_3, window_bounds = array<i64: 1, 128>}, {pipeline_mode = #tpu.pipeline_mode<synchronous>, transform_indices = @transform_4, window_bounds = array<i64: 4, 128>}, {transform_indices = @transform_5, window_bounds = array<i64: 1, 128>}]} {
    %c0 = arith.constant 0 : index
    %c0_0 = arith.constant 0 : index
    %0 = vector.load %arg1[%c0, %c0_0] : memref<128x32xf32, #tpu.memory_space<vmem>>, vector<128x32xf32>
    %1 = arith.truncf %0 : vector<128x32xf32> to vector<128x32xbf16>
    %c0_1 = arith.constant 0 : index
    %c0_2 = arith.constant 0 : index
    %2 = vector.load %arg2[%c0_1, %c0_2] : memref<32x128xbf16, #tpu.memory_space<vmem>>, vector<32x128xbf16>
    %cst = arith.constant dense<0.000000e+00> : vector<128x128xf32>
    %3 = tpu.matmul %1, %2, %cst {dimension_numbers = #tpu.dot_dimension_numbers<[1], [0], [0], [1], [0, 0, 1, 1], [], []>} : vector<128x32xbf16>, vector<32x128xbf16>, vector<128x128xf32> -> vector<128x128xf32>
    %c0_3 = arith.constant 0 : index
    %c0_4 = arith.constant 0 : index
    %4 = vector.load %arg5[%c0_3, %c0_4] : memref<4x128xf32, #tpu.memory_space<vmem>>, vector<1x128xf32>
    %5 = vector.broadcast %4 : vector<1x128xf32> to vector<128x128xf32>
    %6 = arith.addf %3, %5 : vector<128x128xf32>
    %cst_5 = arith.constant 0.000000e+00 : f32
    %7 = vector.broadcast %cst_5 : f32 to vector<128x128xf32>
    %8 = arith.cmpf oge, %6, %7 : vector<128x128xf32>
    %cst_6 = arith.constant 0.00999999977 : f32
    %9 = vector.broadcast %cst_6 : f32 to vector<128x128xf32>
    %10 = arith.mulf %9, %6 : vector<128x128xf32>
    %11 = arith.select %8, %6, %10 : vector<128x128xi1>, vector<128x128xf32>
    %12 = arith.truncf %11 : vector<128x128xf32> to vector<128x128xbf16>
    %c0_7 = arith.constant 0 : index
    %c0_8 = arith.constant 0 : index
    %c0_9 = arith.constant 0 : index
    %13 = vector.load %arg3[%c0_7, %c0_8, %c0_9] : memref<2x128x128xbf16, #tpu.memory_space<vmem>>, vector<1x128x128xbf16>
    %14 = vector.shape_cast %13 : vector<1x128x128xbf16> to vector<128x128xbf16>
    %cst_10 = arith.constant dense<0.000000e+00> : vector<128x128xf32>
    %15 = tpu.matmul %12, %14, %cst_10 {dimension_numbers = #tpu.dot_dimension_numbers<[1], [0], [0], [1], [0, 0, 1, 1], [], []>} : vector<128x128xbf16>, vector<128x128xbf16>, vector<128x128xf32> -> vector<128x128xf32>
    %c1 = arith.constant 1 : index
    %c0_11 = arith.constant 0 : index
    %16 = vector.load %arg5[%c1, %c0_11] : memref<4x128xf32, #tpu.memory_space<vmem>>, vector<1x128xf32>
    %17 = vector.broadcast %16 : vector<1x128xf32> to vector<128x128xf32>
    %18 = arith.addf %15, %17 : vector<128x128xf32>
    %cst_12 = arith.constant 0.000000e+00 : f32
    %19 = vector.broadcast %cst_12 : f32 to vector<128x128xf32>
    %20 = arith.cmpf oge, %18, %19 : vector<128x128xf32>
    %cst_13 = arith.constant 0.00999999977 : f32
    %21 = vector.broadcast %cst_13 : f32 to vector<128x128xf32>
    %22 = arith.mulf %21, %18 : vector<128x128xf32>
    %23 = arith.select %20, %18, %22 : vector<128x128xi1>, vector<128x128xf32>
    %24 = arith.truncf %23 : vector<128x128xf32> to vector<128x128xbf16>
    %c1_14 = arith.constant 1 : index
    %c0_15 = arith.constant 0 : index
    %c0_16 = arith.constant 0 : index
    %25 = vector.load %arg3[%c1_14, %c0_15, %c0_16] : memref<2x128x128xbf16, #tpu.memory_space<vmem>>, vector<1x128x128xbf16>
    %26 = vector.shape_cast %25 : vector<1x128x128xbf16> to vector<128x128xbf16>
    %cst_17 = arith.constant dense<0.000000e+00> : vector<128x128xf32>
    %27 = tpu.matmul %24, %26, %cst_17 {dimension_numbers = #tpu.dot_dimension_numbers<[1], [0], [0], [1], [0, 0, 1, 1], [], []>} : vector<128x128xbf16>, vector<128x128xbf16>, vector<128x128xf32> -> vector<128x128xf32>
    %c2 = arith.constant 2 : index
    %c0_18 = arith.constant 0 : index
    %28 = vector.load %arg5[%c2, %c0_18] : memref<4x128xf32, #tpu.memory_space<vmem>>, vector<1x128xf32>
    %29 = vector.broadcast %28 : vector<1x128xf32> to vector<128x128xf32>
    %30 = arith.addf %27, %29 : vector<128x128xf32>
    %cst_19 = arith.constant 0.000000e+00 : f32
    %31 = vector.broadcast %cst_19 : f32 to vector<128x128xf32>
    %32 = arith.cmpf oge, %30, %31 : vector<128x128xf32>
    %cst_20 = arith.constant 0.00999999977 : f32
    %33 = vector.broadcast %cst_20 : f32 to vector<128x128xf32>
    %34 = arith.mulf %33, %30 : vector<128x128xf32>
    %35 = arith.select %32, %30, %34 : vector<128x128xi1>, vector<128x128xf32>
    %c0_21 = arith.constant 0 : index
    %c0_22 = arith.constant 0 : index
    %36 = vector.load %arg4[%c0_21, %c0_22] : memref<1x128xbf16, #tpu.memory_space<vmem>>, vector<1x128xbf16>
    %37 = arith.truncf %35 : vector<128x128xf32> to vector<128x128xbf16>
    %cst_23 = arith.constant dense<0.000000e+00> : vector<1x128xf32>
    %38 = tpu.matmul %36, %37, %cst_23 {dimension_numbers = #tpu.dot_dimension_numbers<[1], [1], [0], [0], [0, 0, 1, 0], [], []>} : vector<1x128xbf16>, vector<128x128xbf16>, vector<1x128xf32> -> vector<1x128xf32>
    %c3 = arith.constant 3 : index
    %c0_24 = arith.constant 0 : index
    %39 = vector.load %arg5[%c3, %c0_24] : memref<4x128xf32, #tpu.memory_space<vmem>>, vector<1x1xf32>
    %40 = vector.broadcast %39 : vector<1x1xf32> to vector<1x128xf32>
    %41 = arith.addf %38, %40 : vector<1x128xf32>
    %cst_25 = arith.constant 0.000000e+00 : f32
    %42 = vector.broadcast %cst_25 : f32 to vector<1x128xf32>
    %43 = arith.subf %42, %41 : vector<1x128xf32>
    %44 = math.exp %43 : vector<1x128xf32>
    %cst_26 = arith.constant 1.000000e+00 : f32
    %45 = vector.broadcast %cst_26 : f32 to vector<1x128xf32>
    %46 = arith.addf %45, %44 : vector<1x128xf32>
    %47 = tpu.reciprocal %46 {approx = true} : vector<1x128xf32> -> vector<1x128xf32>
    %c0_27 = arith.constant 0 : index
    %c0_28 = arith.constant 0 : index
    %48 = vector.load %arg6[%c0_27, %c0_28] : memref<1x128xf32, #tpu.memory_space<vmem>>, vector<1x128xf32>
    tpu.vector_store %arg6[%c0_27, %c0_28], %47 {strides = array<i32>} : memref<1x128xf32, #tpu.memory_space<vmem>>, vector<1x128xf32>,
    return
  }
  func.func @transform_0(%arg0: i32) -> (i32, i32) {
    %c0_i32 = arith.constant 0 : i32
    %c0_i32_0 = arith.constant 0 : i32
    return %arg0, %c0_i32 : i32, i32
  }
  func.func @transform_1(%arg0: i32) -> (i32, i32) {
    %c0_i32 = arith.constant 0 : i32
    %c0_i32_0 = arith.constant 0 : i32
    %c0_i32_1 = arith.constant 0 : i32
    return %c0_i32, %c0_i32_0 : i32, i32
  }
  func.func @transform_2(%arg0: i32) -> (i32, i32, i32) {
    %c0_i32 = arith.constant 0 : i32
    %c0_i32_0 = arith.constant 0 : i32
    %c0_i32_1 = arith.constant 0 : i32
    %c0_i32_2 = arith.constant 0 : i32
    return %c0_i32, %c0_i32_0, %c0_i32_1 : i32, i32, i32
  }
  func.func @transform_3(%arg0: i32) -> (i32, i32) {
    %c0_i32 = arith.constant 0 : i32
    %c0_i32_0 = arith.constant 0 : i32
    %c0_i32_1 = arith.constant 0 : i32
    return %c0_i32, %c0_i32_0 : i32, i32
  }
  func.func @transform_4(%arg0: i32) -> (i32, i32) {
    %c0_i32 = arith.constant 0 : i32
    %c0_i32_0 = arith.constant 0 : i32
    %c0_i32_1 = arith.constant 0 : i32
    return %c0_i32, %c0_i32_0 : i32, i32
  }
  func.func @transform_5(%arg0: i32) -> (i32, i32) {
    %c0_i32 = arith.constant 0 : i32
    %c0_i32_0 = arith.constant 0 : i32
    return %c0_i32, %arg0 : i32, i32
  }
}

</mosaic_0001>

<bundles_post_ra>
// kernel: tpu_custom_call.1
= control target key start
LH: loop header
LB: loop body
LE: loop exit
PB: predicated region body
PF: predicated region fallthrough
CT: control target
= control target key end

     0   :  { %vm67_vm0 = vcmask 261120   ;;  %s1242_s0 = inlined_call_operand.vmem [shape: f32[128,32], index: 0, kind: input, shape index: {}]   ;;  %s1243_s1 = inlined_call_operand.vmem [shape: bf16[32,128], index: 1, kind: input, shape index: {}]   ;;  %s1244_s2 = inlined_call_operand.vmem [shape: bf16[2,128,128], index: 2, kind: input, shape index: {}]   ;;  %s1245_s3 = inlined_call_operand.vmem [shape: bf16[1,128], index: 3, kind: input, shape index: {}]   ;;  %s1246_s4 = inlined_call_operand.vmem [shape: f32[4,128], index: 4, kind: input, shape index: {}]   ;;  %s1247_s5 = inlined_call_operand.hbm [shape: f32[1,128], index: 5, kind: output, shape index: {}]  }
   0x1   :  { %v962_v0 = vld [vmem:[%s1243_s1] sm:$0xff]   ;;  %v963_v1 = vld [vmem:[%s1243_s1 + $0x8] sm:$0xff]   ;;  %v24_v5 = vld [vmem:[%s1242_s0 + $0x10] sm:$0xff] }
   0x2   :  { %853 = vmatprep.subr.bf16.mxu0 %v962_v0  ;;  %v22_v2 = vld [vmem:[%s1242_s0] sm:$0xff]  ;;  %v23_v3 = vld [vmem:[%s1242_s0 + $0x8] sm:$0xff]  ;;  %v25_v6 = vld [vmem:[%s1242_s0 + $0x18] sm:$0xff] }
   0x3   :  { %854 = vmatpush3.bf16.msra.mxu0 %v962_v0  ;;  %v38_v4 = vpack.c.bf16 %v23_v3, %v22_v2  ;;  %v26_v7 = vld [vmem:[%s1242_s0 + $0x20] sm:$0xff]  ;;  %v27_v8 = vld [vmem:[%s1242_s0 + $0x28] sm:$0xff]  ;;  %v39_v9 = vpack.c.bf16 %v25_v6, %v24_v5  ;;  %v28_v12 = vld [vmem:[%s1242_s0 + $0x30] sm:$0xff] }
   0x4   :  { %855 = vmatprep.subr.bf16.mxu0 %v963_v1  ;;  %v40_v10 = vpack.c.bf16 %v27_v8, %v26_v7  ;;  %v964_v11 = vld [vmem:[%s1244_s2] sm:$0xff]   ;;  %v29_v13 = vld [vmem:[%s1242_s0 + $0x38] sm:$0xff]  ;;  %v965_v14 = vld [vmem:[%s1244_s2 + $0x8] sm:$0xff]  }
   0x5   :  { %857 = vmatprep.mubr.msk.bf16.mxu0 %vm67_vm0, %v38_v4  ;;  %v30_v15 = vld [vmem:[%s1242_s0 + $0x40] sm:$0xff]  ;;  %873 = vmatprep.subr.bf16.mxu1 %v964_v11  ;;  %v31_v16 = vld [vmem:[%s1242_s0 + $0x48] sm:$0xff]  ;;  %v966_v17 = vld [vmem:[%s1244_s2 + $0x10] sm:$0xff]   ;;  %v41_v18 = vpack.c.bf16 %v29_v13, %v28_v12 }
   0x6   :  { %874 = vmatpush3.bf16.msra.mxu1 %v964_v11  ;;  %v967_v19 = vld [vmem:[%s1244_s2 + $0x18] sm:$0xff]   ;;  %v42_v20 = vpack.c.bf16 %v31_v16, %v30_v15  ;;  %v32_v21 = vld [vmem:[%s1242_s0 + $0x50] sm:$0xff] }
   0x7   :  { %856 = vmatpush3.bf16.msra.mxu0 %v963_v1  ;;  %875 = vmatprep.subr.bf16.mxu1 %v965_v14  ;;  %v33_v22 = vld [vmem:[%s1242_s0 + $0x58] sm:$0xff] }
   0xa   :  { %858 = vmatmul.mubr.msk.bf16.vlgmr.msra.gmra.mrb[0].mxu0 %vm67_vm0, %v39_v9  ;;  %876 = vmatpush3.bf16.msra.mxu1 %v965_v14 }
   0xb   :  { %861 = vmatprep.mubr.msk.bf16.mxu0 %vm67_vm0, %v40_v10  ;;  %877 = vmatprep.subr.bf16.mxu1 %v966_v17 }
   0xe   :  { %878 = vmatpush3.bf16.msra.mxu1 %v966_v17 }
  0x12   :  { %862 = vmatmul.mubr.msk.bf16.gmra.mrb[4].mxu0 %vm67_vm0, %v41_v18 }
  0x13   :  { %865 = vmatprep.mubr.msk.bf16.mxu0 %vm67_vm0, %v42_v20 }
  0x14   :  { %10 = vsyncpa [#allocation3], 0  ;;  %v34_v23 = vld [vmem:[%s1242_s0 + $0x60] sm:$0xff]  ;;  %v35_v24 = vld [vmem:[%s1242_s0 + $0x68] sm:$0xff]  ;;  %879 = vmatprep.subr.bf16.mxu1 %v967_v19  ;;  %v43_v26 = vpack.c.bf16 %v33_v22, %v32_v21  ;;  %s1011_s15 = smov [#allocation2]  }
  0x15   :  { %v968_v25 = vld [vmem:[%s1244_s2 + $0x20] sm:$0xff]   ;;  %v44_v27 = vpack.c.bf16 %v35_v24, %v34_v23  ;;  %880 = vmatpush3.bf16.msra.mxu1 %v967_v19  ;;  %v36_v28 = vld [vmem:[%s1242_s0 + $0x70] sm:$0xff]  ;;  %v37_v29 = vld [vmem:[%s1242_s0 + $0x78] sm:$0xff]  ;;  %s749_s16 = sshll.u32 %s1011_s15, 4  ;;  %s750_s16 = int_to_ptr.vmem [resolvable:$true] %s749_s16 }
  0x16   :  { %881 = vmatprep.subr.bf16.mxu1 %v968_v25  ;;  %v45_v30 = vpack.c.bf16 %v37_v29, %v36_v28  ;;  %v969_v31 = vld [vmem:[%s1244_s2 + $0x28] sm:$0xff]   ;;  %v970_v32 = vld [vmem:[%s1244_s2 + $0x30] sm:$0xff]   ;;  %v971_v33 = vld [vmem:[%s1244_s2 + $0x38] sm:$0xff]   ;;  %s984_s17 = scalar_lea.vmem %s750_s16, 16  ;;  %p989_p1 = scmp.lt.s32.totalorder %s750_s16, %s750_s16 }
  0x17   :  { %v972_v34 = vld [vmem:[%s1244_s2 + $0x40] sm:$0xff]   ;;  %v973_v35 = vld [vmem:[%s1244_s2 + $0x48] sm:$0xff]   ;;  %v974_v36 = vld [vmem:[%s1244_s2 + $0x50] sm:$0xff]   ;;  %p985_p0 = scmp.ne.s32.totalorder %s750_s16, %s984_s17 }
  0x18   :  { %905 = vmatprep.subr.bf16.mxu0 %v972_v34  ;;  %v975_v37 = vld [vmem:[%s1244_s2 + $0x58] sm:$0xff]   ;;  %v976_v38 = vld [vmem:[%s1244_s2 + $0x60] sm:$0xff]   ;;  %v977_v39 = vld [vmem:[%s1244_s2 + $0x68] sm:$0xff]  }
  0x19   :  { %882 = vmatpush3.bf16.msra.mxu1 %v968_v25  ;;  %906 = vmatpush3.bf16.msra.mxu0 %v972_v34  ;;  %v1149_v40 = vld [vmem:[%s1246_s4] ss:$0 sm:$0xff] }
  0x1a   :  { %866 = vmatmul.mubr.msk.bf16.gmra.mrb[8].mxu0 %vm67_vm0, %v43_v26  ;;  %883 = vmatprep.subr.bf16.mxu1 %v969_v31 }
  0x1b   :  { %869 = vmatprep.mubr.msk.bf16.mxu0 %vm67_vm0, %v44_v27  ;;  %907 = vmatprep.subr.bf16.mxu0 %v973_v35 }
  0x1d   :  { %884 = vmatpush3.bf16.msra.mxu1 %v969_v31  ;;  %908 = vmatpush3.bf16.msra.mxu0 %v973_v35 }
  0x1e   :  { %885 = vmatprep.subr.bf16.mxu1 %v970_v32  ;;  %909 = vmatprep.subr.bf16.mxu0 %v974_v36 }
  0x21   :  { %886 = vmatpush3.bf16.msra.mxu1 %v970_v32  ;;  %910 = vmatpush3.bf16.msra.mxu0 %v974_v36 }
  0x22   :  { %870 = vmatmul.mubr.msk.bf16.gmra.mrb[12].mxu0 %vm67_vm0, %v45_v30  ;;  %887 = vmatprep.subr.bf16.mxu1 %v971_v33 }
  0x23   :  { %911 = vmatprep.subr.bf16.mxu0 %v975_v37 }
  0x25   :  { %888 = vmatpush3.bf16.msra.mxu1 %v971_v33  ;;  %912 = vmatpush3.bf16.msra.mxu0 %v975_v37 }
  0x26   :  { %913 = vmatprep.subr.bf16.mxu0 %v976_v38 }
  0x29   :  { %914 = vmatpush3.bf16.msra.mxu0 %v976_v38 }
  0x2a   :  { %915 = vmatprep.subr.bf16.mxu0 %v977_v39 }
  0x2d   :  { %916 = vmatpush3.bf16.msra.mxu0 %v977_v39 }
  0xdd   :  { %v859_v41 = vpop.f32.mrb[0].mxu0 }
  0xde   :  { %v135_v42 = vadd.f32 %v859_v41, %v1149_v40  ;;  %v126_v43 = vpop.f32.mrb[1].mxu0 }
  0xdf   :  { %v127_v44 = vadd.f32 %v1149_v40, %v126_v43  ;;  %v860_v45 = vpop.f32.mrb[2].mxu0 }
  0xe0   :  { %v207_v46 = vmul.f32 0.01, %v135_v42  ;;  %v138_v47 = vadd.f32 %v860_v45, %v1149_v40  ;;  %v129_v48 = vpop.f32.mrb[3].mxu0  ;;  %vm191_vm1 = vcmp.ge.f32.partialorder %v135_v42, 0.0 }
  0xe1   :  { %v205_v49 = vmul.f32 0.01, %v127_v44  ;;  %v130_v50 = vadd.f32 %v1149_v40, %v129_v48  ;;  %vm189_vm3 = vcmp.ge.f32.partialorder %v127_v44, 0.0 }
  0xe2   :  { %vm192_vm2 = vcmp.ge.f32.partialorder %v138_v47, 0.0  ;;  %v208_v51 = vmul.f32 0.01, %v138_v47  ;;  %v223_v53 = vsel %vm191_vm1, %v135_v42, %v207_v46 }
  0xe3   :  { %v206_v52 = vmul.f32 0.01, %v130_v50  ;;  %vm190_vm4 = vcmp.ge.f32.partialorder %v130_v50, 0.0  ;;  %v221_v56 = vsel %vm189_vm3, %v127_v44, %v205_v49 }
  0xe4   :  { %v224_v54 = vsel %vm192_vm2, %v138_v47, %v208_v51  ;;  %v1176_v51 = vld [vmem:[%s1246_s4 + $0x1] ss:$0 sm:$0xff] }
  0xe5   :  { %v863_v55 = vpop.f32.mrb[4].mxu0  ;;  %v222_v57 = vsel %vm190_vm4, %v130_v50, %v206_v52  ;;  %v238_v58 = vpack.c.bf16 %v224_v54, %v223_v53  ;;  %v978_v50 = vld [vmem:[%s1244_s2 + $0x70] sm:$0xff]  }
  0xe6   :  { %v151_v59 = vadd.f32 %v863_v55, %v1149_v40  ;;  %v142_v60 = vpop.f32.mrb[5].mxu0  ;;  %v237_v61 = vpack.c.bf16 %v222_v57, %v221_v56  ;;  %917 = vmatprep.subr.bf16.mxu0 %v978_v50 }
  0xe7   :  { %v143_v62 = vadd.f32 %v1149_v40, %v142_v60  ;;  %v864_v63 = vpop.f32.mrb[6].mxu0  ;;  %918 = vmatpush3.bf16.msra.mxu0 %v978_v50 }
  0xe8   :  { %vm195_vm5 = vcmp.ge.f32.partialorder %v151_v59, 0.0  ;;  %v211_v0 = vmul.f32 0.01, %v151_v59  ;;  %v154_v1 = vadd.f32 %v864_v63, %v1149_v40  ;;  %v145_v2 = vpop.f32.mrb[7].mxu0  ;;  %889 = vmatprep.mubr.bf16.mxu1 %v237_v61 }
  0xe9   :  { %vm193_vm6 = vcmp.ge.f32.partialorder %v143_v62, 0.0  ;;  %v209_v3 = vmul.f32 0.01, %v143_v62  ;;  %v146_v4 = vadd.f32 %v1149_v40, %v145_v2  ;;  %890 = vmatmul.mubr.bf16.vlgmr.msra.gmra.mrb[0].mxu1 %v238_v58 }
  0xea   :  { %vm196_vm7 = vcmp.ge.f32.partialorder %v154_v1, 0.0  ;;  %v212_v5 = vmul.f32 0.01, %v154_v1  ;;  %v227_v6 = vsel %vm195_vm5, %v151_v59, %v211_v0 }
  0xeb   :  { %vm194_vm8 = vcmp.ge.f32.partialorder %v146_v4, 0.0  ;;  %v210_v7 = vmul.f32 0.01, %v146_v4  ;;  %v225_v8 = vsel %vm193_vm6, %v143_v62, %v209_v3 }
  0xec   :  { %v228_v9 = vsel %vm196_vm7, %v154_v1, %v212_v5 }
  0xed   :  { %v867_v10 = vpop.f32.mrb[8].mxu0  ;;  %v226_v11 = vsel %vm194_vm8, %v146_v4, %v210_v7  ;;  %v240_v12 = vpack.c.bf16 %v228_v9, %v227_v6 }
  0xee   :  { %v167_v13 = vadd.f32 %v867_v10, %v1149_v40  ;;  %v158_v14 = vpop.f32.mrb[9].mxu0  ;;  %v239_v15 = vpack.c.bf16 %v226_v11, %v225_v8 }
  0xef   :  { %v159_v16 = vadd.f32 %v1149_v40, %v158_v14  ;;  %v868_v17 = vpop.f32.mrb[10].mxu0 }
  0xf0   :  { %vm199_vm9 = vcmp.ge.f32.partialorder %v167_v13, 0.0  ;;  %v215_v18 = vmul.f32 0.01, %v167_v13  ;;  %v170_v19 = vadd.f32 %v868_v17, %v1149_v40  ;;  %v161_v20 = vpop.f32.mrb[11].mxu0  ;;  %893 = vmatprep.mubr.bf16.mxu1 %v239_v15 }
  0xf1   :  { %vm197_vm10 = vcmp.ge.f32.partialorder %v159_v16, 0.0  ;;  %v213_v21 = vmul.f32 0.01, %v159_v16  ;;  %v162_v22 = vadd.f32 %v1149_v40, %v161_v20  ;;  %894 = vmatmul.mubr.bf16.gmra.mrb[4].mxu1 %v240_v12 }
  0xf2   :  { %vm200_vm11 = vcmp.ge.f32.partialorder %v170_v19, 0.0  ;;  %v216_v23 = vmul.f32 0.01, %v170_v19  ;;  %v231_v24 = vsel %vm199_vm9, %v167_v13, %v215_v18 }
  0xf3   :  { %vm198_vm12 = vcmp.ge.f32.partialorder %v162_v22, 0.0  ;;  %v214_v25 = vmul.f32 0.01, %v162_v22  ;;  %v229_v26 = vsel %vm197_vm10, %v159_v16, %v213_v21 }
  0xf4   :  { %v232_v27 = vsel %vm200_vm11, %v170_v19, %v216_v23 }
  0xf5   :  { %v230_v28 = vsel %vm198_vm12, %v162_v22, %v214_v25  ;;  %v242_v29 = vpack.c.bf16 %v232_v27, %v231_v24  ;;  %v871_v30 = vpop.f32.mrb[12].mxu0 }
  0xf6   :  { %v241_v31 = vpack.c.bf16 %v230_v28, %v229_v26  ;;  %v183_v32 = vadd.f32 %v871_v30, %v1149_v40  ;;  %v174_v33 = vpop.f32.mrb[13].mxu0 }
  0xf7   :  { %v175_v34 = vadd.f32 %v1149_v40, %v174_v33  ;;  %v872_v35 = vpop.f32.mrb[14].mxu0 }
  0xf8   :  { %897 = vmatprep.mubr.bf16.mxu1 %v241_v31  ;;  %vm203_vm13 = vcmp.ge.f32.partialorder %v183_v32, 0.0  ;;  %v219_v36 = vmul.f32 0.01, %v183_v32  ;;  %v186_v37 = vadd.f32 %v872_v35, %v1149_v40  ;;  %v177_v38 = vpop.f32.mrb[15].mxu0 }
  0xf9   :  { %898 = vmatmul.mubr.bf16.gmra.mrb[8].mxu1 %v242_v29  ;;  %vm201_vm14 = vcmp.ge.f32.partialorder %v175_v34, 0.0  ;;  %v217_v39 = vmul.f32 0.01, %v175_v34  ;;  %v178_v41 = vadd.f32 %v1149_v40, %v177_v38  ;;  %v979_v40 = vld [vmem:[%s1244_s2 + $0x78] sm:$0xff]  }
  0xfa   :  { %vm204_vm15 = vcmp.ge.f32.partialorder %v186_v37, 0.0  ;;  %v220_v42 = vmul.f32 0.01, %v186_v37  ;;  %v235_v43 = vsel %vm203_vm13, %v183_v32, %v219_v36  ;;  %919 = vmatprep.subr.bf16.mxu0 %v979_v40 }
  0xfb   :  { %vm202_vm0 = vcmp.ge.f32.partialorder %v178_v41, 0.0  ;;  %v218_v44 = vmul.f32 0.01, %v178_v41  ;;  %v233_v45 = vsel %vm201_vm14, %v175_v34, %v217_v39  ;;  %920 = vmatpush3.bf16.msra.mxu0 %v979_v40 }
  0xfc   :  { %v236_v46 = vsel %vm204_vm15, %v186_v37, %v220_v42 }
  0xfd   :  { %v234_v47 = vsel %vm202_vm0, %v178_v41, %v218_v44  ;;  %v244_v48 = vpack.c.bf16 %v236_v46, %v235_v43 }
  0xfe   :  { %v243_v49 = vpack.c.bf16 %v234_v47, %v233_v45 }
 0x100   :  { %901 = vmatprep.mubr.bf16.mxu1 %v243_v49 }
 0x101   :  { %902 = vmatmul.mubr.bf16.gmra.mrb[12].mxu1 %v244_v48 }
 0x1bc   :  { %v891_v52 = vpop.f32.mrb[0].mxu1 }
 0x1bd   :  { %v357_v53 = vadd.f32 %v891_v52, %v1176_v51  ;;  %v348_v54 = vpop.f32.mrb[1].mxu1 }
 0x1be   :  { %v349_v55 = vadd.f32 %v1176_v51, %v348_v54  ;;  %v892_v56 = vpop.f32.mrb[2].mxu1 }
 0x1bf   :  { %v429_v57 = vmul.f32 0.01, %v357_v53  ;;  %v360_v58 = vadd.f32 %v892_v56, %v1176_v51  ;;  %v351_v59 = vpop.f32.mrb[3].mxu1  ;;  %vm413_vm1 = vcmp.ge.f32.partialorder %v357_v53, 0.0 }
 0x1c0   :  { %v427_v60 = vmul.f32 0.01, %v349_v55  ;;  %v352_v61 = vadd.f32 %v1176_v51, %v351_v59  ;;  %vm411_vm2 = vcmp.ge.f32.partialorder %v349_v55, 0.0 }
 0x1c1   :  { %vm414_vm3 = vcmp.ge.f32.partialorder %v360_v58, 0.0  ;;  %v430_v62 = vmul.f32 0.01, %v360_v58  ;;  %v445_v0 = vsel %vm413_vm1, %v357_v53, %v429_v57  ;;  %vm1009_vm1 = vmmov 0  }
 0x1c2   :  { %vm412_vm4 = vcmp.ge.f32.partialorder %v352_v61, 0.0  ;;  %v428_v63 = vmul.f32 0.01, %v352_v61  ;;  %v443_v4 = vsel %vm411_vm2, %v349_v55, %v427_v60 }
 0x1c3   :  { %v446_v1 = vsel %vm414_vm3, %v360_v58, %v430_v62  ;;  %v1010_v62 = vmov 0  }
 0x1c4   :  { %v460_v2 = vpack.c.bf16 %v446_v1, %v445_v0  ;;  %v895_v3 = vpop.f32.mrb[4].mxu1  ;;  %v444_v5 = vsel %vm412_vm4, %v352_v61, %v428_v63  ;;  %v1008_v61 = vmov 0.0   ;;  %961 = vset.pattern.permute.xlu0 %v1010_v62  ;;  %v1202_v63 = vld [vmem:[%s1246_s4 + $0x2] ss:$0 sm:$0xff] }
 0x1c5   :  { %v373_v6 = vadd.f32 %v895_v3, %v1176_v51  ;;  %v364_v7 = vpop.f32.mrb[5].mxu1  ;;  %v459_v8 = vpack.c.bf16 %v444_v5, %v443_v4  ;;  %937 = vmatprep.subr.bf16.mxu1 %v1008_v61  ;;  %953 = vmatprep.mubr.msk.bf16.mxu1 %vm1009_vm1, %v1008_v61 }
 0x1c6   :  { %v365_v9 = vadd.f32 %v1176_v51, %v364_v7  ;;  %v896_v10 = vpop.f32.mrb[6].mxu1 }
 0x1c7   :  { %v433_v11 = vmul.f32 0.01, %v373_v6  ;;  %v376_v12 = vadd.f32 %v896_v10, %v1176_v51  ;;  %v367_v13 = vpop.f32.mrb[7].mxu1  ;;  %921 = vmatprep.mubr.bf16.mxu0 %v459_v8  ;;  %vm417_vm5 = vcmp.ge.f32.partialorder %v373_v6, 0.0 }
 0x1c8   :  { %v431_v14 = vmul.f32 0.01, %v365_v9  ;;  %v368_v15 = vadd.f32 %v1176_v51, %v367_v13  ;;  %922 = vmatmul.mubr.bf16.vlgmr.msra.gmra.mrb[16].mxu0 %v460_v2  ;;  %vm415_vm6 = vcmp.ge.f32.partialorder %v365_v9, 0.0 }
 0x1c9   :  { %vm418_vm7 = vcmp.ge.f32.partialorder %v376_v12, 0.0  ;;  %v434_v16 = vmul.f32 0.01, %v376_v12  ;;  %v449_v18 = vsel %vm417_vm5, %v373_v6, %v433_v11 }
 0x1ca   :  { %vm416_vm8 = vcmp.ge.f32.partialorder %v368_v15, 0.0  ;;  %v432_v17 = vmul.f32 0.01, %v368_v15  ;;  %v447_v21 = vsel %vm415_vm6, %v365_v9, %v431_v14 }
 0x1cb   :  { %v450_v19 = vsel %vm418_vm7, %v376_v12, %v434_v16 }
 0x1cc   :  { %v899_v20 = vpop.f32.mrb[8].mxu1  ;;  %v448_v22 = vsel %vm416_vm8, %v368_v15, %v432_v17  ;;  %v462_v23 = vpack.c.bf16 %v450_v19, %v449_v18 }
 0x1cd   :  { %v389_v24 = vadd.f32 %v899_v20, %v1176_v51  ;;  %v380_v25 = vpop.f32.mrb[9].mxu1  ;;  %v461_v26 = vpack.c.bf16 %v448_v22, %v447_v21 }
 0x1ce   :  { %v381_v27 = vadd.f32 %v1176_v51, %v380_v25  ;;  %v900_v28 = vpop.f32.mrb[10].mxu1 }
 0x1cf   :  { %vm421_vm9 = vcmp.ge.f32.partialorder %v389_v24, 0.0  ;;  %v437_v29 = vmul.f32 0.01, %v389_v24  ;;  %v392_v30 = vadd.f32 %v900_v28, %v1176_v51  ;;  %v383_v31 = vpop.f32.mrb[11].mxu1  ;;  %925 = vmatprep.mubr.bf16.mxu0 %v461_v26 }
 0x1d0   :  { %vm419_vm10 = vcmp.ge.f32.partialorder %v381_v27, 0.0  ;;  %v435_v32 = vmul.f32 0.01, %v381_v27  ;;  %v384_v33 = vadd.f32 %v1176_v51, %v383_v31  ;;  %926 = vmatmul.mubr.bf16.gmra.mrb[20].mxu0 %v462_v23 }
 0x1d1   :  { %vm422_vm11 = vcmp.ge.f32.partialorder %v392_v30, 0.0  ;;  %v438_v34 = vmul.f32 0.01, %v392_v30  ;;  %v453_v35 = vsel %vm421_vm9, %v389_v24, %v437_v29 }
 0x1d2   :  { %vm420_vm12 = vcmp.ge.f32.partialorder %v384_v33, 0.0  ;;  %v436_v36 = vmul.f32 0.01, %v384_v33  ;;  %v451_v37 = vsel %vm419_vm10, %v381_v27, %v435_v32 }
 0x1d3   :  { %v454_v38 = vsel %vm422_vm11, %v392_v30, %v438_v34 }
 0x1d4   :  { %v452_v39 = vsel %vm420_vm12, %v384_v33, %v436_v36  ;;  %v464_v41 = vpack.c.bf16 %v454_v38, %v453_v35  ;;  %v903_v42 = vpop.f32.mrb[12].mxu1 }
 0x1d5   :  { %v463_v43 = vpack.c.bf16 %v452_v39, %v451_v37  ;;  %v405_v44 = vadd.f32 %v903_v42, %v1176_v51  ;;  %v396_v45 = vpop.f32.mrb[13].mxu1 }
 0x1d6   :  { %v397_v46 = vadd.f32 %v1176_v51, %v396_v45  ;;  %v904_v47 = vpop.f32.mrb[14].mxu1 }
 0x1d7   :  { %929 = vmatprep.mubr.bf16.mxu0 %v463_v43  ;;  %vm425_vm13 = vcmp.ge.f32.partialorder %v405_v44, 0.0  ;;  %v441_v48 = vmul.f32 0.01, %v405_v44  ;;  %v408_v49 = vadd.f32 %v904_v47, %v1176_v51  ;;  %v399_v50 = vpop.f32.mrb[15].mxu1 }
 0x1d8   :  { %930 = vmatmul.mubr.bf16.gmra.mrb[24].mxu0 %v464_v41  ;;  %vm423_vm14 = vcmp.ge.f32.partialorder %v397_v46, 0.0  ;;  %v439_v40 = vmul.f32 0.01, %v397_v46  ;;  %v400_v52 = vadd.f32 %v1176_v51, %v399_v50  ;;  %v691_v51 = vld [vmem:[%s1246_s4 + $0x3] sm:$0x1] }
 0x1d9   :  { %vm426_vm15 = vcmp.ge.f32.partialorder %v408_v49, 0.0  ;;  %v442_v53 = vmul.f32 0.01, %v408_v49  ;;  %v457_v54 = vsel %vm425_vm13, %v405_v44, %v441_v48  ;;  %694 = vperm.xlu0 %961, %v691_v51  }
 0x1da   :  { %vm424_vm0 = vcmp.ge.f32.partialorder %v400_v52, 0.0  ;;  %v440_v55 = vmul.f32 0.01, %v400_v52  ;;  %v455_v56 = vsel %vm423_vm14, %v397_v46, %v439_v40 }
 0x1db   :  { %v458_v57 = vsel %vm426_vm15, %v408_v49, %v442_v53 }
 0x1dc   :  { %v456_v58 = vsel %vm424_vm0, %v400_v52, %v440_v55  ;;  %v466_v59 = vpack.c.bf16 %v458_v57, %v457_v54 }
 0x1dd   :  { %v465_v60 = vpack.c.bf16 %v456_v58, %v455_v56 }
 0x1df   :  { %933 = vmatprep.mubr.bf16.mxu0 %v465_v60 }
 0x1e0   :  { %934 = vmatmul.mubr.bf16.gmra.mrb[28].mxu0 %v466_v59 }
 0x29b   :  { %v923_v0 = vpop.f32.mrb[16].mxu0 }
 0x29c   :  { %v580_v1 = vadd.f32 %v923_v0, %v1202_v63  ;;  %v571_v2 = vpop.f32.mrb[17].mxu0 }
 0x29d   :  { %v572_v3 = vadd.f32 %v1202_v63, %v571_v2  ;;  %v924_v4 = vpop.f32.mrb[18].mxu0 }
 0x29e   :  { %v652_v5 = vmul.f32 0.01, %v580_v1  ;;  %v583_v6 = vadd.f32 %v924_v4, %v1202_v63  ;;  %v574_v7 = vpop.f32.mrb[19].mxu0  ;;  %vm636_vm2 = vcmp.ge.f32.partialorder %v580_v1, 0.0 }
 0x29f   :  { %v650_v8 = vmul.f32 0.01, %v572_v3  ;;  %v575_v9 = vadd.f32 %v1202_v63, %v574_v7  ;;  %vm634_vm3 = vcmp.ge.f32.partialorder %v572_v3, 0.0 }
 0x2a0   :  { %vm637_vm4 = vcmp.ge.f32.partialorder %v583_v6, 0.0  ;;  %v653_v10 = vmul.f32 0.01, %v583_v6  ;;  %v668_v12 = vsel %vm636_vm2, %v580_v1, %v652_v5 }
 0x2a1   :  { %vm635_vm5 = vcmp.ge.f32.partialorder %v575_v9, 0.0  ;;  %v651_v11 = vmul.f32 0.01, %v575_v9  ;;  %v666_v14 = vsel %vm634_vm3, %v572_v3, %v650_v8 }
 0x2a2   :  { %v669_v13 = vsel %vm637_vm4, %v583_v6, %v653_v10  ;;  %v695_v10 = vpop.permute.xlu0 %694 }
 0x2a3   :  { %v684_v15 = vpack.c.bf16 %v669_v13, %v668_v12  ;;  %v667_v16 = vsel %vm635_vm5, %v575_v9, %v651_v11  ;;  %v927_v17 = vpop.f32.mrb[20].mxu0 }
 0x2a4   :  { %v683_v18 = vpack.c.bf16 %v667_v16, %v666_v14  ;;  %v596_v19 = vadd.f32 %v927_v17, %v1202_v63  ;;  %v587_v20 = vpop.f32.mrb[21].mxu0 }
 0x2a5   :  { %v588_v21 = vadd.f32 %v1202_v63, %v587_v20  ;;  %v928_v22 = vpop.f32.mrb[22].mxu0 }
 0x2a6   :  { %v656_v23 = vmul.f32 0.01, %v596_v19  ;;  %v599_v24 = vadd.f32 %v928_v22, %v1202_v63  ;;  %v590_v25 = vpop.f32.mrb[23].mxu0  ;;  %938 = vmatpush3.bf16.xpose.msra.mxu1 %v683_v18  ;;  %vm640_vm6 = vcmp.ge.f32.partialorder %v596_v19, 0.0 }
 0x2a7   :  { %v654_v26 = vmul.f32 0.01, %v588_v21  ;;  %v591_v27 = vadd.f32 %v1202_v63, %v590_v25  ;;  %939 = vmatprep.subr.bf16.mxu1 %v1008_v61  ;;  %vm638_vm7 = vcmp.ge.f32.partialorder %v588_v21, 0.0 }
 0x2a8   :  { %vm641_vm8 = vcmp.ge.f32.partialorder %v599_v24, 0.0  ;;  %v657_v28 = vmul.f32 0.01, %v599_v24  ;;  %v672_v30 = vsel %vm640_vm6, %v596_v19, %v656_v23 }
 0x2a9   :  { %vm639_vm9 = vcmp.ge.f32.partialorder %v591_v27, 0.0  ;;  %v655_v29 = vmul.f32 0.01, %v591_v27  ;;  %v670_v32 = vsel %vm638_vm7, %v588_v21, %v654_v26 }
 0x2aa   :  { %v673_v31 = vsel %vm641_vm8, %v599_v24, %v657_v28 }
 0x2ab   :  { %v686_v33 = vpack.c.bf16 %v673_v31, %v672_v30  ;;  %v671_v34 = vsel %vm639_vm9, %v591_v27, %v655_v29  ;;  %v931_v35 = vpop.f32.mrb[24].mxu0 }
 0x2ac   :  { %v685_v36 = vpack.c.bf16 %v671_v34, %v670_v32  ;;  %v612_v37 = vadd.f32 %v931_v35, %v1202_v63  ;;  %v603_v38 = vpop.f32.mrb[25].mxu0 }
 0x2ad   :  { %v604_v39 = vadd.f32 %v1202_v63, %v603_v38  ;;  %v932_v41 = vpop.f32.mrb[26].mxu0 }
 0x2ae   :  { %vm644_vm10 = vcmp.ge.f32.partialorder %v612_v37, 0.0  ;;  %v660_v42 = vmul.f32 0.01, %v612_v37  ;;  %v615_v43 = vadd.f32 %v932_v41, %v1202_v63  ;;  %v606_v44 = vpop.f32.mrb[27].mxu0  ;;  %940 = vmatpush3.bf16.xpose.msra.mxu1 %v684_v15 }
 0x2af   :  { %vm642_vm11 = vcmp.ge.f32.partialorder %v604_v39, 0.0  ;;  %v658_v45 = vmul.f32 0.01, %v604_v39  ;;  %v607_v46 = vadd.f32 %v1202_v63, %v606_v44  ;;  %941 = vmatprep.subr.bf16.mxu1 %v1008_v61 }
 0x2b0   :  { %v676_v47 = vsel %vm644_vm10, %v612_v37, %v660_v42  ;;  %vm645_vm12 = vcmp.ge.f32.partialorder %v615_v43, 0.0  ;;  %v661_v48 = vmul.f32 0.01, %v615_v43 }
 0x2b1   :  { %v674_v49 = vsel %vm642_vm11, %v604_v39, %v658_v45  ;;  %vm643_vm13 = vcmp.ge.f32.partialorder %v607_v46, 0.0  ;;  %v659_v50 = vmul.f32 0.01, %v607_v46 }
 0x2b2   :  { %v677_v40 = vsel %vm645_vm12, %v615_v43, %v661_v48 }
 0x2b3   :  { %v688_v52 = vpack.c.bf16 %v677_v40, %v676_v47  ;;  %v675_v53 = vsel %vm643_vm13, %v607_v46, %v659_v50  ;;  %v935_v54 = vpop.f32.mrb[28].mxu0 }
 0x2b4   :  { %v687_v55 = vpack.c.bf16 %v675_v53, %v674_v49  ;;  %v628_v56 = vadd.f32 %v935_v54, %v1202_v63  ;;  %v619_v57 = vpop.f32.mrb[29].mxu0 }
 0x2b5   :  { %v620_v58 = vadd.f32 %v1202_v63, %v619_v57  ;;  %v936_v59 = vpop.f32.mrb[30].mxu0 }
 0x2b6   :  { %942 = vmatpush3.bf16.xpose.msra.mxu1 %v685_v36  ;;  %vm648_vm14 = vcmp.ge.f32.partialorder %v628_v56, 0.0  ;;  %v664_v60 = vmul.f32 0.01, %v628_v56  ;;  %v631_v51 = vadd.f32 %v936_v59, %v1202_v63  ;;  %v622_v62 = vpop.f32.mrb[31].mxu0 }
 0x2b7   :  { %vm646_vm15 = vcmp.ge.f32.partialorder %v620_v58, 0.0  ;;  %v662_v0 = vmul.f32 0.01, %v620_v58  ;;  %v623_v1 = vadd.f32 %v1202_v63, %v622_v62  ;;  %943 = vmatprep.subr.bf16.mxu1 %v1008_v61  ;;  %v682_v63 = vld [vmem:[%s1245_s3] sm:$0x1]  ;;  %s988_s3 = scalar_lea.vmem %s750_s16, 32 }
 0x2b8   :  { %v680_v2 = vsel %vm648_vm14, %v628_v56, %v664_v60  ;;  %vm649_vm0 = vcmp.ge.f32.partialorder %v631_v51, 0.0  ;;  %v665_v3 = vmul.f32 0.01, %v631_v51  ;;  %p990_p2 = scmp.lt.s32.totalorder %s988_s3, %s984_s17 }
 0x2b9   :  { %v678_v4 = vsel %vm646_vm15, %v620_v58, %v662_v0  ;;  %vm647_vm1 = vcmp.ge.f32.partialorder %v623_v1, 0.0  ;;  %v663_v5 = vmul.f32 0.01, %v623_v1 }
 0x2ba   :  { %v681_v6 = vsel %vm649_vm0, %v631_v51, %v665_v3  ;;  %p991_p3 = por %p990_p2, %p989_p1 }
 0x2bb   :  { %v690_v7 = vpack.c.bf16 %v681_v6, %v680_v2  ;;  %v679_v8 = vsel %vm647_vm1, %v623_v1, %v663_v5 }
 0x2bc   :  { %v689_v9 = vpack.c.bf16 %v679_v8, %v678_v4  ;;  %p992_p4 = pnand %p991_p3, %p985_p0 }
 0x2be   :  { %944 = vmatpush3.bf16.xpose.msra.mxu1 %v686_v33 }
 0x2bf   :  { %945 = vmatprep.subr.bf16.mxu1 %v1008_v61 }
 0x2c6   :  { %946 = vmatpush3.bf16.xpose.msra.mxu1 %v687_v55 }
 0x2c7   :  { %947 = vmatprep.subr.bf16.mxu1 %v1008_v61 }
 0x2ce   :  { %948 = vmatpush3.bf16.xpose.msra.mxu1 %v688_v52 }
 0x2cf   :  { %949 = vmatprep.subr.bf16.mxu1 %v1008_v61 }
 0x2d6   :  { %950 = vmatpush3.bf16.xpose.msra.mxu1 %v689_v9 }
 0x2d7   :  { %951 = vmatprep.subr.bf16.mxu1 %v1008_v61 }
 0x2de   :  { %952 = vmatpush3.bf16.xpose.msra.mxu1 %v690_v7 }
 0x2e5   :  { %954 = vmatmul.mubr.bf16.vlgmr.msra.gmra.mrb[16].mxu1 %v682_v63 }
 0x3b8   :  { %v731_v11 = vpop.f32.mrb[16].mxu1 }
 0x3b9   :  { %v732_v12 = vadd.f32 %v731_v11, %v695_v10  ;;  %v955_v13 = vpop.f32.mrb[17].mxu1 }
 0x3ba   :  { %v734_v14 = vpop.f32.mrb[18].mxu1 }
 0x3bb   :  { %v737_v15 = vsub.f32 0.0, %v732_v12  ;;  %v956_v16 = vpop.f32.mrb[19].mxu1 }
 0x3bd   :  { %v738_v17 = vmul.f32 1.442695, %v737_v15 }
 0x3bf   :  { %980 = vpow2.f32 %v738_v17 }
 0x3c9   :  { %v981_v18 = vpop.eup %980 }
 0x3ca   :  { %v740_v19 = vadd.f32 1.0, %v981_v18 }
 0x3cc   :  { %982 = vrcp.f32 %v740_v19 }
 0x3d6   :  { %v983_v61 = vpop.eup %982 }
 0x3d7   :  { %742 = vst [vmem:[#allocation2] sm:$0x1] %v983_v61 }
 0x3d8   :  { %995 = shalt.err (!%p992_p4)
}
 0x3d9   :  { %s996_s19 = scalar_lea.hbm %s1247_s5, 16 }
 0x3da   :  { %p997_p5 = scmp.ne.s32.totalorder %s1247_s5, %s996_s19  ;;  %p1000_p6 = scmp.lt.u32.totalorder %s996_s19, %s1247_s5 }
 0x3dc   :  { %p1002_p7 = pnand %p1000_p6, %p997_p5 }
 0x3de   :  { %1005 = shalt.err (!%p1002_p7)
}
 0x3df   :  { %752 = dma.vmem_to_hbm [thread:$0]  %s750_s16, 16, %s1247_s5, [#allocation3]  }
 0x3e0   :  { %1006 = dma.done.wait [#allocation3], 16  }
 0x3e1   :  { %1007 = vsyncadd [#allocation3], 4294967280 }
 0x3e2   :  { %756 = vsyncpa [#allocation3], 1 }

</bundles_post_ra>
